<compile_context>
chip_gen: v7x
topology: tpu7x:2x2x1
jax: 0.10.0
libtpu: 0.0.40
codegen_flags: <defaults>
</compile_context>

<pallas_src>
import functools
import math

import jax
import jax.numpy as jnp
from jax import lax
from jax.experimental import pallas as pl
from jax.experimental.pallas import tpu as pltpu


def _round_up(x, m):
    return ((x + m - 1) // m) * m


def _flash_attn_kernel(qi_map_ref, ki_map_ref,            # scalar prefetch (SMEM)
                       q_ref, k_ref, v_ref, wo_ref,       # inputs  (VMEM blocks)
                       o_ref,                             # output  (VMEM block)
                       m_sc, l_sc, acc_sc,                # scratch
                       *, tq, tk):
    step = pl.program_id(1)
    qi = qi_map_ref[step]
    ki = ki_map_ref[step]

    # ---- new q-tile group: reset online-softmax state ----
    @pl.when(ki == 0)
    def _init():
        m_sc[...] = jnp.full_like(m_sc, -jnp.inf)
        l_sc[...] = jnp.zeros_like(l_sc)
        acc_sc[...] = jnp.zeros_like(acc_sc)

    q = q_ref[0]                                   # (tq, hp)  scale already folded into Wq
    k = k_ref[0]                                   # (tk, hp)
    v = v_ref[0]                                   # (tk, hp)

    # q @ k^T without materializing a transpose: contract last dims on the MXU.
    s = lax.dot_general(q, k, (((1,), (1,)), ((), ())),
                        preferred_element_type=jnp.float32)      # (tq, tk) f32

    def _online_update(scores):
        m_prev = m_sc[...]
        m_new = jnp.maximum(m_prev, jnp.max(scores, axis=-1, keepdims=True))
        alpha = jnp.exp(m_prev - m_new)
        p = jnp.exp(scores - m_new)
        l_sc[...] = alpha * l_sc[...] + jnp.sum(p, axis=-1, keepdims=True)
        acc_sc[...] = alpha * acc_sc[...] + jnp.dot(
            p.astype(v.dtype), v, preferred_element_type=jnp.float32)
        m_sc[...] = m_new

    is_diag = ki == qi   # the only visited tile straddling the causal diagonal (tq == tk)

    @pl.when(is_diag)
    def _diag():
        # q-tile start == k-tile start on the diagonal, so relative offsets suffice.
        row = lax.broadcasted_iota(jnp.int32, (tq, tk), 0)
        col = lax.broadcasted_iota(jnp.int32, (tq, tk), 1)
        # The causal mask also neutralizes zero-padded key positions: for every real
        # query row they sit at column > row.
        _online_update(jnp.where(row >= col, s, jnp.float32(-1e30)))

    @pl.when(jnp.logical_not(is_diag))
    def _below_diag():
        _online_update(s)

    # ---- the diagonal tile is the last kv tile this q tile needs: finalize ----
    @pl.when(is_diag)
    def _finalize():
        inv_l = pl.reciprocal(l_sc[...], approx=True)
        ctx = (acc_sc[...] * inv_l).astype(v_ref.dtype)           # (tq, hp)
        y = jnp.dot(ctx, wo_ref[...], preferred_element_type=jnp.float32)
        o_ref[0] = y.astype(o_ref.dtype)


def _pick_seq_tile(S):
    """Generation-aware sequence tile (tq == tk).

    256 for chips with a 256x256 MXU (v6e / v7x), 128 for v5e's 128x128 MXU;
    clamped for short sequences and never chosen if it adds more tail padding
    than a 128 tile would.
    """
    s8 = _round_up(max(S, 1), 8)
    if s8 <= 128:
        return s8
    kind = ""
    try:
        kind = jax.devices()[0].device_kind.lower()
    except Exception:
        pass
    prefers_256 = ("v6" in kind) or ("v7" in kind) or ("7x" in kind)
    if prefers_256 and _round_up(S, 256) <= _round_up(S, 128):
        return 256
    return 128


def _derive_vmem_limit(tile, hp, dtype, kv_depth):
    """Derive vmem_limit_bytes from the actual block + scratch footprint."""
    itemsize = jnp.dtype(dtype).itemsize
    act = tile * hp * itemsize                 # one (tile, hp) activation block
    w = hp * hp * itemsize                     # wo block
    blocks = 2 * act                           # q stream  (double buffered)
    blocks += 2 * kv_depth * act               # k and v streams
    blocks += 2 * w                            # wo (constant index, double buffered)
    blocks += 2 * act                          # output stream
    scratch = tile * hp * 4 + 2 * tile * 128 * 4   # f32 acc + m/l (lane-padded)
    need = blocks + scratch
    # 2x headroom for compiler-internal scratch, clamped to [16 MiB, 64 MiB (v7x physical)].
    return int(min(max(2 * need + (2 << 20), 16 << 20), 64 << 20))


def naseer_attention_adapter(hidden_states, wq, wk, wv, wo):
    """Pallas equivalent of NASEERAttentionAdapter.forward.

    Args:
      hidden_states: [B, S, H] array.
      wq, wk, wv, wo: [H, H] projection weights.
    Returns:
      (output, None) — matching the PyTorch adapter's return signature.
    """
    B, S, H = hidden_states.shape
    dtype = hidden_states.dtype
    scale = 1.0 / math.sqrt(H)

    # ---- 1. Fused QKV projection, hoisted out of the attention kernel ----
    # One [B*S, H] @ [H, 3H] matmul (plain XLA). The 1/sqrt(H) scale is folded into
    # Wq (an H x H elementwise mul, negligible) so neither the kernel nor the
    # activations pay for it.
    wqkv = jnp.concatenate(
        [wq.astype(dtype) * jnp.asarray(scale, dtype),
         wk.astype(dtype), wv.astype(dtype)], axis=1)              # (H, 3H)
    qkv = jnp.einsum("bsh,hd->bsd", hidden_states, wqkv)           # (B, S, 3H)
    q, k, v = qkv[..., :H], qkv[..., H:2 * H], qkv[..., 2 * H:]

    # ---- 2. Tiling / padding (only when not already aligned) ----
    tile = _pick_seq_tile(S)
    hp = _round_up(H, 128)             # lane-dense hidden dim
    sp = _round_up(S, tile)
    T = sp // tile                     # number of sequence tiles

    if sp != S or hp != H:
        pad = ((0, 0), (0, sp - S), (0, hp - H))
        q = jnp.pad(q, pad)
        k = jnp.pad(k, pad)
        v = jnp.pad(v, pad)
    wo_p = wo.astype(dtype)
    if hp != H:
        wo_p = jnp.pad(wo_p, ((0, hp - H), (0, hp - H)))

    # ---- 3. Triangular (q-tile, kv-tile) schedule via scalar prefetch ----
    # Only lower-triangular pairs (ki <= qi) are visited, so above-diagonal tiles
    # cost neither a kv DMA nor a grid step.
    qi_list, ki_list = [], []
    for qi in range(T):
        for ki in range(qi + 1):
            qi_list.append(qi)
            ki_list.append(ki)
    qi_map = jnp.asarray(qi_list, dtype=jnp.int32)
    ki_map = jnp.asarray(ki_list, dtype=jnp.int32)
    n_steps = len(qi_list)

    kernel = functools.partial(_flash_attn_kernel, tq=tile, tk=tile)

    # Deeper buffering of the k/v streams only when the kv loop is long enough to
    # benefit; their block index changes every triangular step (the hot stream).
    kv_depth = 3 if T >= 4 else 2
    kv_kwargs = {"pipeline_mode": pl.Buffered(kv_depth)} if kv_depth != 2 else {}

    out_padded = pl.pallas_call(
        kernel,
        out_shape=jax.ShapeDtypeStruct((B, sp, hp), dtype),
        grid_spec=pltpu.PrefetchScalarGridSpec(
            num_scalar_prefetch=2,
            grid=(B, n_steps),
            in_specs=[
                # q tile: index constant across a q-tile group -> DMA elided on repeats.
                pl.BlockSpec((1, tile, hp), lambda b, s, qm, km: (b, qm[s], 0)),
                # k / v tiles: indexed by the triangular kv position.
                pl.BlockSpec((1, tile, hp), lambda b, s, qm, km: (b, km[s], 0),
                             **kv_kwargs),
                pl.BlockSpec((1, tile, hp), lambda b, s, qm, km: (b, km[s], 0),
                             **kv_kwargs),
                # Output projection weight: constant index map -> stays VMEM resident.
                pl.BlockSpec((hp, hp), lambda b, s, qm, km: (0, 0)),
            ],
            out_specs=pl.BlockSpec((1, tile, hp), lambda b, s, qm, km: (b, qm[s], 0)),
            scratch_shapes=[
                pltpu.VMEM((tile, 1), jnp.float32),    # running max  m
                pltpu.VMEM((tile, 1), jnp.float32),    # running sum  l
                pltpu.VMEM((tile, hp), jnp.float32),   # un-normalized accumulator
            ],
        ),
        compiler_params=pltpu.CompilerParams(
            # Batch axis shards across TensorCores (v7x megacore); the flattened
            # triangular axis carries the online-softmax recurrence -> "arbitrary".
            dimension_semantics=("parallel", "arbitrary"),
            vmem_limit_bytes=_derive_vmem_limit(tile, hp, dtype, kv_depth),
        ),
    )(qi_map, ki_map, q, k, v, wo_p)

    out = out_padded[:, :S, :H] if (sp != S or hp != H) else out_padded
    return (out, None)


def _reference(hidden_states, wq, wk, wv, wo):
    # Pure-JAX reference for correctness checking.
    x = hidden_states.astype(jnp.float32)
    B, S, H = x.shape
    q = x @ wq.astype(jnp.float32)
    k = x @ wk.astype(jnp.float32)
    v = x @ wv.astype(jnp.float32)
    scores = jnp.einsum("bqd,bkd->bqk", q, k) / math.sqrt(H)
    causal = jnp.arange(S)[:, None] >= jnp.arange(S)[None, :]
    scores = jnp.where(causal, scores, -1e30)
    attn = jax.nn.softmax(scores, axis=-1)
    ctx = jnp.einsum("bqk,bkd->bqd", attn, v)
    return (ctx @ wo.astype(jnp.float32)).astype(hidden_states.dtype)


def _run_case(key, B, S, H, atol, rtol):
    k_x, k_q, k_k, k_v, k_o = jax.random.split(key, 5)
    init_scale = 1.0 / math.sqrt(H)
    hidden_states = jax.random.normal(k_x, (B, S, H), dtype=jnp.float32)
    wq = jax.random.normal(k_q, (H, H), dtype=jnp.float32) * init_scale
    wk = jax.random.normal(k_k, (H, H), dtype=jnp.float32) * init_scale
    wv = jax.random.normal(k_v, (H, H), dtype=jnp.float32) * init_scale
    wo = jax.random.normal(k_o, (H, H), dtype=jnp.float32) * init_scale

    out, attn_weights = naseer_attention_adapter(hidden_states, wq, wk, wv, wo)
    out = jax.block_until_ready(out)
    assert attn_weights is None
    assert out.shape == (B, S, H)

    ref = _reference(hidden_states, wq, wk, wv, wo)
    max_diff = float(jnp.max(jnp.abs(out - ref)))
    assert jnp.allclose(out, ref, atol=atol, rtol=rtol), (
        f"mismatch vs pure-JAX reference (B={B}, S={S}, H={H}); "
        f"max abs diff = {max_diff}")


if __name__ == "__main__":
    key = jax.random.PRNGKey(0)
    k1, k2 = jax.random.split(key)

    # Small shape implied by the adapter's usage (batch=2, seq=8, hidden=32).
    _run_case(k1, B=2, S=8, H=32, atol=2e-3, rtol=2e-3)

    # Larger shape exercising the multi-tile triangular flash path:
    # seq padding, hidden padding (96 -> 128), causal tile skipping via the
    # triangular grid, and cross-kv-tile online-softmax accumulation.
    _run_case(k2, B=1, S=320, H=96, atol=2e-3, rtol=2e-3)

    print("KERNEL_OK")
</pallas_src>

<mosaic_0001>
module attributes {stable_mosaic.version = 11 : i64} {
  func.func @_flash_attn_kernel(%arg0: i32, %arg1: i32, %arg2: memref<1xi32, #tpu.memory_space<smem>>, %arg3: memref<1xi32, #tpu.memory_space<smem>>, %arg4: memref<1x8x128xf32, #tpu.memory_space<vmem>>, %arg5: memref<1x8x128xf32, #tpu.memory_space<vmem>>, %arg6: memref<1x8x128xf32, #tpu.memory_space<vmem>>, %arg7: memref<128x128xf32, #tpu.memory_space<vmem>>, %arg8: memref<1x8x128xf32, #tpu.memory_space<vmem>>, %arg9: memref<8x1xf32, #tpu.memory_space<vmem>>, %arg10: memref<8x1xf32, #tpu.memory_space<vmem>>, %arg11: memref<8x128xf32, #tpu.memory_space<vmem>>) attributes {dimension_semantics = [#tpu.dimension_semantics<parallel>, #tpu.dimension_semantics<arbitrary>], iteration_bounds = array<i64: 2, 1>, scalar_prefetch = 2 : i64, scratch_operands = 3 : i64, tpu.core_type = #tpu.core_type<tc>, window_params = [{transform_indices = @transform_0, window_bounds = array<i64: 1, 8, 128>}, {transform_indices = @transform_1, window_bounds = array<i64: 1, 8, 128>}, {transform_indices = @transform_2, window_bounds = array<i64: 1, 8, 128>}, {pipeline_mode = #tpu.pipeline_mode<synchronous>, transform_indices = @transform_3, window_bounds = array<i64: 128, 128>}, {transform_indices = @transform_4, window_bounds = array<i64: 1, 8, 128>}]} {
    %0 = arith.index_cast %arg1 : i32 to index
    %1 = memref.load %arg2[%0] : memref<1xi32, #tpu.memory_space<smem>>
    %2 = arith.index_cast %arg1 : i32 to index
    %3 = memref.load %arg3[%2] : memref<1xi32, #tpu.memory_space<smem>>
    %c0_i32 = arith.constant 0 : i32
    %4 = arith.cmpi eq, %3, %c0_i32 : i32
    %5 = arith.extui %4 : i1 to i32
    %c0_i32_0 = arith.constant 0 : i32
    %6 = arith.cmpi ne, %5, %c0_i32_0 : i32
    scf.if %6 {
      %cst_12 = arith.constant 0xFF800000 : f32
      %22 = vector.broadcast %cst_12 : f32 to vector<8x1xf32>
      %c0_13 = arith.constant 0 : index
      %c0_14 = arith.constant 0 : index
      %23 = vector.load %arg9[%c0_13, %c0_14] : memref<8x1xf32, #tpu.memory_space<vmem>>, vector<8x1xf32>
      tpu.vector_store %arg9[%c0_13, %c0_14], %22 {strides = array<i32>} : memref<8x1xf32, #tpu.memory_space<vmem>>, vector<8x1xf32>,
      %cst_15 = arith.constant 0.000000e+00 : f32
      %24 = vector.broadcast %cst_15 : f32 to vector<8x1xf32>
      %c0_16 = arith.constant 0 : index
      %c0_17 = arith.constant 0 : index
      %25 = vector.load %arg10[%c0_16, %c0_17] : memref<8x1xf32, #tpu.memory_space<vmem>>, vector<8x1xf32>
      tpu.vector_store %arg10[%c0_16, %c0_17], %24 {strides = array<i32>} : memref<8x1xf32, #tpu.memory_space<vmem>>, vector<8x1xf32>,
      %cst_18 = arith.constant 0.000000e+00 : f32
      %26 = vector.broadcast %cst_18 : f32 to vector<8x128xf32>
      %c0_19 = arith.constant 0 : index
      %c0_20 = arith.constant 0 : index
      %27 = vector.load %arg11[%c0_19, %c0_20] : memref<8x128xf32, #tpu.memory_space<vmem>>, vector<8x128xf32>
      tpu.vector_store %arg11[%c0_19, %c0_20], %26 {strides = array<i32>} : memref<8x128xf32, #tpu.memory_space<vmem>>, vector<8x128xf32>,
    } else {
    }
    %c0 = arith.constant 0 : index
    %c0_1 = arith.constant 0 : index
    %c0_2 = arith.constant 0 : index
    %7 = vector.load %arg4[%c0, %c0_1, %c0_2] : memref<1x8x128xf32, #tpu.memory_space<vmem>>, vector<1x8x128xf32>
    %8 = vector.shape_cast %7 : vector<1x8x128xf32> to vector<8x128xf32>
    %c0_3 = arith.constant 0 : index
    %c0_4 = arith.constant 0 : index
    %c0_5 = arith.constant 0 : index
    %9 = vector.load %arg5[%c0_3, %c0_4, %c0_5] : memref<1x8x128xf32, #tpu.memory_space<vmem>>, vector<1x8x128xf32>
    %10 = vector.shape_cast %9 : vector<1x8x128xf32> to vector<8x128xf32>
    %c0_6 = arith.constant 0 : index
    %c0_7 = arith.constant 0 : index
    %c0_8 = arith.constant 0 : index
    %11 = vector.load %arg6[%c0_6, %c0_7, %c0_8] : memref<1x8x128xf32, #tpu.memory_space<vmem>>, vector<1x8x128xf32>
    %12 = vector.shape_cast %11 : vector<1x8x128xf32> to vector<8x128xf32>
    %cst = arith.constant dense<0.000000e+00> : vector<8x8xf32>
    %13 = tpu.matmul %8, %10, %cst {dimension_numbers = #tpu.dot_dimension_numbers<[1], [1], [0], [0], [0, 0, 1, 0], [], []>} : vector<8x128xf32>, vector<8x128xf32>, vector<8x8xf32> -> vector<8x8xf32>
    %14 = arith.cmpi eq, %3, %1 : i32
    %15 = arith.extui %14 : i1 to i32
    %c0_i32_9 = arith.constant 0 : i32
    %16 = arith.cmpi ne, %15, %c0_i32_9 : i32
    scf.if %16 {
      %22 = tpu.iota {dimensions = array<i32: 0>} : vector<8x8xi32>
      %23 = tpu.iota {dimensions = array<i32: 1>} : vector<8x8xi32>
      %24 = arith.cmpi sge, %22, %23 : vector<8x8xi32>
      %cst_12 = arith.constant -1.000000e+30 : f32
      %25 = vector.broadcast %cst_12 : f32 to vector<8x8xf32>
      %26 = arith.select %24, %13, %25 : vector<8x8xi1>, vector<8x8xf32>
      %c0_13 = arith.constant 0 : index
      %c0_14 = arith.constant 0 : index
      %27 = vector.load %arg9[%c0_13, %c0_14] : memref<8x1xf32, #tpu.memory_space<vmem>>, vector<8x1xf32>
      %cst_15 = arith.constant dense<0xFF800000> : vector<8xf32>
      %28 = vector.multi_reduction <maximumf>, %26, %cst_15 [1] : vector<8x8xf32> to vector<8xf32>
      %29 = vector.shape_cast %28 : vector<8xf32> to vector<8x1xf32>
      %30 = arith.maximumf %27, %29 : vector<8x1xf32>
      %31 = arith.subf %27, %30 : vector<8x1xf32>
      %32 = math.exp %31 : vector<8x1xf32>
      %33 = vector.broadcast %30 : vector<8x1xf32> to vector<8x8xf32>
      %34 = arith.subf %26, %33 : vector<8x8xf32>
      %35 = math.exp %34 : vector<8x8xf32>
      %c0_16 = arith.constant 0 : index
      %c0_17 = arith.constant 0 : index
      %36 = vector.load %arg10[%c0_16, %c0_17] : memref<8x1xf32, #tpu.memory_space<vmem>>, vector<8x1xf32>
      %37 = arith.mulf %32, %36 : vector<8x1xf32>
      %cst_18 = arith.constant dense<0.000000e+00> : vector<8xf32>
      %38 = vector.multi_reduction <add>, %35, %cst_18 [1] : vector<8x8xf32> to vector<8xf32>
      %39 = vector.shape_cast %38 : vector<8xf32> to vector<8x1xf32>
      %40 = arith.addf %37, %39 : vector<8x1xf32>
      %c0_19 = arith.constant 0 : index
      %c0_20 = arith.constant 0 : index
      %41 = vector.load %arg10[%c0_19, %c0_20] : memref<8x1xf32, #tpu.memory_space<vmem>>, vector<8x1xf32>
      tpu.vector_store %arg10[%c0_19, %c0_20], %40 {strides = array<i32>} : memref<8x1xf32, #tpu.memory_space<vmem>>, vector<8x1xf32>,
      %c0_21 = arith.constant 0 : index
      %c0_22 = arith.constant 0 : index
      %42 = vector.load %arg11[%c0_21, %c0_22] : memref<8x128xf32, #tpu.memory_space<vmem>>, vector<8x128xf32>
      %43 = vector.broadcast %32 : vector<8x1xf32> to vector<8x128xf32>
      %44 = arith.mulf %43, %42 : vector<8x128xf32>
      %cst_23 = arith.constant dense<0.000000e+00> : vector<8x128xf32>
      %45 = tpu.matmul %35, %12, %cst_23 {dimension_numbers = #tpu.dot_dimension_numbers<[1], [0], [0], [1], [0, 0, 1, 1], [], []>} : vector<8x8xf32>, vector<8x128xf32>, vector<8x128xf32> -> vector<8x128xf32>
      %46 = arith.addf %44, %45 : vector<8x128xf32>
      %c0_24 = arith.constant 0 : index
      %c0_25 = arith.constant 0 : index
      %47 = vector.load %arg11[%c0_24, %c0_25] : memref<8x128xf32, #tpu.memory_space<vmem>>, vector<8x128xf32>
      tpu.vector_store %arg11[%c0_24, %c0_25], %46 {strides = array<i32>} : memref<8x128xf32, #tpu.memory_space<vmem>>, vector<8x128xf32>,
      %c0_26 = arith.constant 0 : index
      %c0_27 = arith.constant 0 : index
      %48 = vector.load %arg9[%c0_26, %c0_27] : memref<8x1xf32, #tpu.memory_space<vmem>>, vector<8x1xf32>
      tpu.vector_store %arg9[%c0_26, %c0_27], %30 {strides = array<i32>} : memref<8x1xf32, #tpu.memory_space<vmem>>, vector<8x1xf32>,
    } else {
    }
    %true = arith.constant true
    %17 = arith.xori %14, %true : i1
    %18 = arith.extui %17 : i1 to i32
    %c0_i32_10 = arith.constant 0 : i32
    %19 = arith.cmpi ne, %18, %c0_i32_10 : i32
    scf.if %19 {
      %c0_12 = arith.constant 0 : index
      %c0_13 = arith.constant 0 : index
      %22 = vector.load %arg9[%c0_12, %c0_13] : memref<8x1xf32, #tpu.memory_space<vmem>>, vector<8x1xf32>
      %cst_14 = arith.constant dense<0xFF800000> : vector<8xf32>
      %23 = vector.multi_reduction <maximumf>, %13, %cst_14 [1] : vector<8x8xf32> to vector<8xf32>
      %24 = vector.shape_cast %23 : vector<8xf32> to vector<8x1xf32>
      %25 = arith.maximumf %22, %24 : vector<8x1xf32>
      %26 = arith.subf %22, %25 : vector<8x1xf32>
      %27 = math.exp %26 : vector<8x1xf32>
      %28 = vector.broadcast %25 : vector<8x1xf32> to vector<8x8xf32>
      %29 = arith.subf %13, %28 : vector<8x8xf32>
      %30 = math.exp %29 : vector<8x8xf32>
      %c0_15 = arith.constant 0 : index
      %c0_16 = arith.constant 0 : index
      %31 = vector.load %arg10[%c0_15, %c0_16] : memref<8x1xf32, #tpu.memory_space<vmem>>, vector<8x1xf32>
      %32 = arith.mulf %27, %31 : vector<8x1xf32>
      %cst_17 = arith.constant dense<0.000000e+00> : vector<8xf32>
      %33 = vector.multi_reduction <add>, %30, %cst_17 [1] : vector<8x8xf32> to vector<8xf32>
      %34 = vector.shape_cast %33 : vector<8xf32> to vector<8x1xf32>
      %35 = arith.addf %32, %34 : vector<8x1xf32>
      %c0_18 = arith.constant 0 : index
      %c0_19 = arith.constant 0 : index
      %36 = vector.load %arg10[%c0_18, %c0_19] : memref<8x1xf32, #tpu.memory_space<vmem>>, vector<8x1xf32>
      tpu.vector_store %arg10[%c0_18, %c0_19], %35 {strides = array<i32>} : memref<8x1xf32, #tpu.memory_space<vmem>>, vector<8x1xf32>,
      %c0_20 = arith.constant 0 : index
      %c0_21 = arith.constant 0 : index
      %37 = vector.load %arg11[%c0_20, %c0_21] : memref<8x128xf32, #tpu.memory_space<vmem>>, vector<8x128xf32>
      %38 = vector.broadcast %27 : vector<8x1xf32> to vector<8x128xf32>
      %39 = arith.mulf %38, %37 : vector<8x128xf32>
      %cst_22 = arith.constant dense<0.000000e+00> : vector<8x128xf32>
      %40 = tpu.matmul %30, %12, %cst_22 {dimension_numbers = #tpu.dot_dimension_numbers<[1], [0], [0], [1], [0, 0, 1, 1], [], []>} : vector<8x8xf32>, vector<8x128xf32>, vector<8x128xf32> -> vector<8x128xf32>
      %41 = arith.addf %39, %40 : vector<8x128xf32>
      %c0_23 = arith.constant 0 : index
      %c0_24 = arith.constant 0 : index
      %42 = vector.load %arg11[%c0_23, %c0_24] : memref<8x128xf32, #tpu.memory_space<vmem>>, vector<8x128xf32>
      tpu.vector_store %arg11[%c0_23, %c0_24], %41 {strides = array<i32>} : memref<8x128xf32, #tpu.memory_space<vmem>>, vector<8x128xf32>,
      %c0_25 = arith.constant 0 : index
      %c0_26 = arith.constant 0 : index
      %43 = vector.load %arg9[%c0_25, %c0_26] : memref<8x1xf32, #tpu.memory_space<vmem>>, vector<8x1xf32>
      tpu.vector_store %arg9[%c0_25, %c0_26], %25 {strides = array<i32>} : memref<8x1xf32, #tpu.memory_space<vmem>>, vector<8x1xf32>,
    } else {
    }
    %20 = arith.extui %14 : i1 to i32
    %c0_i32_11 = arith.constant 0 : i32
    %21 = arith.cmpi ne, %20, %c0_i32_11 : i32
    scf.if %21 {
      %c0_12 = arith.constant 0 : index
      %c0_13 = arith.constant 0 : index
      %22 = vector.load %arg10[%c0_12, %c0_13] : memref<8x1xf32, #tpu.memory_space<vmem>>, vector<8x1xf32>
      %23 = tpu.reciprocal %22 {approx = true} : vector<8x1xf32> -> vector<8x1xf32>
      %c0_14 = arith.constant 0 : index
      %c0_15 = arith.constant 0 : index
      %24 = vector.load %arg11[%c0_14, %c0_15] : memref<8x128xf32, #tpu.memory_space<vmem>>, vector<8x128xf32>
      %25 = vector.broadcast %23 : vector<8x1xf32> to vector<8x128xf32>
      %26 = arith.mulf %24, %25 : vector<8x128xf32>
      %c0_16 = arith.constant 0 : index
      %c0_17 = arith.constant 0 : index
      %27 = vector.load %arg7[%c0_16, %c0_17] : memref<128x128xf32, #tpu.memory_space<vmem>>, vector<128x128xf32>
      %cst_18 = arith.constant dense<0.000000e+00> : vector<8x128xf32>
      %28 = tpu.matmul %26, %27, %cst_18 {dimension_numbers = #tpu.dot_dimension_numbers<[1], [0], [0], [1], [0, 0, 1, 1], [], []>} : vector<8x128xf32>, vector<128x128xf32>, vector<8x128xf32> -> vector<8x128xf32>
      %c0_19 = arith.constant 0 : index
      %c0_20 = arith.constant 0 : index
      %c0_21 = arith.constant 0 : index
      %29 = vector.load %arg8[%c0_19, %c0_20, %c0_21] : memref<1x8x128xf32, #tpu.memory_space<vmem>>, vector<1x8x128xf32>
      %30 = vector.shape_cast %29 : vector<1x8x128xf32> to vector<8x128xf32>
      %31 = vector.shape_cast %28 : vector<8x128xf32> to vector<1x8x128xf32>
      tpu.vector_store %arg8[%c0_19, %c0_20, %c0_21], %31 {strides = array<i32>} : memref<1x8x128xf32, #tpu.memory_space<vmem>>, vector<1x8x128xf32>,
    } else {
    }
    return
  }
  func.func @transform_0(%arg0: i32, %arg1: i32, %arg2: memref<1xi32, #tpu.memory_space<smem>>, %arg3: memref<1xi32, #tpu.memory_space<smem>>) -> (i32, i32, i32) {
    %0 = arith.index_cast %arg1 : i32 to index
    %1 = memref.load %arg2[%0] : memref<1xi32, #tpu.memory_space<smem>>
    %c0_i32 = arith.constant 0 : i32
    %c0_i32_0 = arith.constant 0 : i32
    return %arg0, %1, %c0_i32 : i32, i32, i32
  }
  func.func @transform_1(%arg0: i32, %arg1: i32, %arg2: memref<1xi32, #tpu.memory_space<smem>>, %arg3: memref<1xi32, #tpu.memory_space<smem>>) -> (i32, i32, i32) {
    %0 = arith.index_cast %arg1 : i32 to index
    %1 = memref.load %arg3[%0] : memref<1xi32, #tpu.memory_space<smem>>
    %c0_i32 = arith.constant 0 : i32
    %c0_i32_0 = arith.constant 0 : i32
    return %arg0, %1, %c0_i32 : i32, i32, i32
  }
  func.func @transform_2(%arg0: i32, %arg1: i32, %arg2: memref<1xi32, #tpu.memory_space<smem>>, %arg3: memref<1xi32, #tpu.memory_space<smem>>) -> (i32, i32, i32) {
    %0 = arith.index_cast %arg1 : i32 to index
    %1 = memref.load %arg3[%0] : memref<1xi32, #tpu.memory_space<smem>>
    %c0_i32 = arith.constant 0 : i32
    %c0_i32_0 = arith.constant 0 : i32
    return %arg0, %1, %c0_i32 : i32, i32, i32
  }
  func.func @transform_3(%arg0: i32, %arg1: i32, %arg2: memref<1xi32, #tpu.memory_space<smem>>, %arg3: memref<1xi32, #tpu.memory_space<smem>>) -> (i32, i32) {
    %c0_i32 = arith.constant 0 : i32
    %c0_i32_0 = arith.constant 0 : i32
    %c0_i32_1 = arith.constant 0 : i32
    return %c0_i32, %c0_i32_0 : i32, i32
  }
  func.func @transform_4(%arg0: i32, %arg1: i32, %arg2: memref<1xi32, #tpu.memory_space<smem>>, %arg3: memref<1xi32, #tpu.memory_space<smem>>) -> (i32, i32, i32) {
    %0 = arith.index_cast %arg1 : i32 to index
    %1 = memref.load %arg2[%0] : memref<1xi32, #tpu.memory_space<smem>>
    %c0_i32 = arith.constant 0 : i32
    %c0_i32_0 = arith.constant 0 : i32
    return %arg0, %1, %c0_i32 : i32, i32, i32
  }
}

</mosaic_0001>

<bundles_post_ra>
// kernel: tpu_custom_call.1
= control target key start
LH: loop header
LB: loop body
LE: loop exit
PB: predicated region body
PF: predicated region fallthrough
CT: control target
= control target key end

     0   :  { %s2040_s0 = inlined_call_operand.<no memory space> [shape: s32[1], index: 0, kind: input, shape index: {}]   ;;  %s2041_s1 = inlined_call_operand.<no memory space> [shape: s32[1], index: 1, kind: input, shape index: {}]   ;;  %s2042_s2 = inlined_call_operand.hbm [shape: f32[2,8,128], index: 2, kind: input, shape index: {}]   ;;  %s2043_s3 = inlined_call_operand.hbm [shape: f32[2,8,128], index: 3, kind: input, shape index: {}]   ;;  %s2044_s4 = inlined_call_operand.hbm [shape: f32[2,8,128], index: 4, kind: input, shape index: {}]   ;;  %s2045_s5 = inlined_call_operand.hbm [shape: f32[128,128], index: 5, kind: input, shape index: {}]   ;;  %s2046_s6 = inlined_call_operand.hbm [shape: f32[2,8,128], index: 6, kind: output, shape index: {}]  }
   0x1   :  { %2069 = sst [smem:[#allocation31_spill]] %s2042_s2 }
   0x2   :  { %2070 = sst [smem:[#allocation32_spill]] %s2043_s3 }
   0x3   :  { %2071 = sst [smem:[#allocation33_spill]] %s2044_s4 }
   0x4   :  { %2072 = sst [smem:[#allocation34_spill]] %s2046_s6 }
   0x5   :  { %11 = sst [smem:[#allocation6]] %s2040_s0 }
   0x6   :  { %12 = sst [smem:[#allocation7]] %s2041_s1 }
   0x7   :  { %13 = vsyncpa [#allocation9], 0 }
   0x8   :  { %15 = vsyncpa [#allocation9 + $0x1], 0 }
   0x9   :  { %16 = vsyncpa [#allocation12], 0 }
   0xa   :  { %18 = vsyncpa [#allocation12 + $0x1], 0 }
   0xb   :  { %19 = vsyncpa [#allocation15], 0 }
   0xc   :  { %20 = vsyncpa [#allocation10], 0 }
   0xd   :  { %22 = vsyncpa [#allocation10 + $0x1], 0  ;;  %s1562_s25 = smov 0   ;;  %s1564_s26 = smov 0  }
   0xe   :  { %s1566_s27 = smov 0   ;;  %s1568_s28 = smov 0  }
   0xf   :  { %s1570_s0 = smov 0   ;;  %s1572_s29 = smov 0  }
  0x10   :  { %s1574_s1 = smov 0   ;;  %s1576_s30 = smov 0  }
  0x11   :  { %s1578_s7 = smov 0   ;;  %s1580_s8 = smov 0  }
  0x12   :  { %s1582_s9 = smov 0   ;;  %s1584_s10 = smov 0  }
  0x13   :  { %s1586_s11 = smov 0   ;;  %s1588_s12 = smov 0  }
  0x14   :  { %s1590_s13 = smov 0  }
  0x15 LB: > { %2073 = sst [smem:[#allocation22_spill]] %s1442_s25  ;;  %s1636_s14 = sadd.s32 4294967295, %s1498_s13   ;;  %s1498_s13 = sphi %s1590_s13, %s28_s13   ;;  %s1494_s12 = sphi %s1588_s12, %s2140_s12   ;;  %s1490_s11 = sphi %s1586_s11, %s2139_s11   ;;  %s1486_s10 = sphi %s1584_s10, %s2138_s10   ;;  %s1482_s9 = sphi %s1582_s9, %s2137_s9   ;;  %s1478_s8 = sphi %s1580_s8, %s2136_s8   ;;  %s1474_s7 = sphi %s1578_s7, %s2129_s7   ;;  %s1470_s30 = sphi %s1576_s30, %s2128_s30   ;;  %s1466_s1 = sphi %s1574_s1, %s2127_s1   ;;  %s1462_s29 = sphi %s1572_s29, %s2135_s29   ;;  %s1458_s0 = sphi %s1570_s0, %s2134_s0   ;;  %s1454_s28 = sphi %s1568_s28, %s2133_s28   ;;  %s1450_s27 = sphi %s1566_s27, %s2132_s27   ;;  %s1446_s26 = sphi %s1564_s26, %s2131_s26   ;;  %s1442_s25 = sphi %s1562_s25, %s2126_s25  }
  0x16   : > { %2074 = sst [smem:[#allocation23_spill]] %s1446_s26  ;;  %s905_s15 = sadd.s32 4294967294, %s1498_s13  }
  0x17   : > { %2075 = sst [smem:[#allocation24_spill]] %s1470_s30  ;;  %s40_s16 = sadd.s32 1, %s1494_s12 }
  0x18   : > { %2076 = sst [smem:[#allocation25_spill]] %s1474_s7  ;;  %p2058_p0 = scmp.eq.s32.totalorder %s1498_s13, 0 }
  0x19   : > { %2077 = sst [smem:[#allocation26_spill]] %s1490_s11  ;;  %p42_p1 = scmp.ge.s32.totalorder %s40_s16, 2 }
  0x1a   : > { %p2060_p2 = scmp.eq.s32.totalorder %s1636_s14, 0  ;;  %s74_s17 = sld [smem:[#allocation7]] }
  0x1b   : > { %s81_s18 = sadd.s32 1, %s1474_s7  ;;  %s2142_s16 = smov (%p42_p1, %s40_s16), 0 }
  0x1c   : > { %2078 = sst [smem:[#allocation27_spill]] %s2142_s16  ;;  %p88_p3 = scmp.ne.s32.totalorder %s1474_s7, %s1470_s30 }
  0x1d   : > { %p94_p4 = scmp.ne.s32.totalorder %s1470_s30, %s1466_s1  ;;  %s46_s19 = ssub.s32 %s1494_s12, %s2142_s16 }
  0x1e   : > { %s1650_s20 = sld [smem:[#allocation6]]  ;;  %p1654_p5 = por %p88_p3, %p2058_p0 }
  0x1f   : > { %p1660_p6 = por %p94_p4, %p2060_p2  ;;  %s162_s23 = sadd.s32 1, %s1450_s27 }
  0x20   : > { %p172_p7 = scmp.ne.s32.totalorder %s1450_s27, %s1446_s26  ;;  %p173_p8 = scmp.eq.s32.totalorder %s1636_s14, 1 }
  0x21   : > { %s2080_s22 = scalar_select %p1660_p6, 1, 0 }
  0x22   : > { %p178_p9 = scmp.ne.s32.totalorder %s1446_s26, %s1442_s25  ;;  %p1670_p10 = scmp.eq.s32.totalorder %s46_s19, 0 }
  0x23   : > { %2081 = sst [smem:[#allocation28_spill]] %s2080_s22  ;;  %p1674_p11 = por %p173_p8, %p172_p7 }
  0x24   : > { %s2082_s24 = scalar_select %p1670_p10, 1, 0 }
  0x25   : > { %s2083_s1 = scalar_select %p1674_p11, 1, 0 }
  0x26   : > { %p179_p12 = scmp.eq.s32.totalorder %s905_s15, 1  ;;  %p2059_p3 = scmp.lt.s32.totalorder %s1498_s13, 2 }
  0x27   : > { %2084 = sst [smem:[#allocation29_spill]] %s2083_s1  ;;  %s232_s6 = sand.u32 1, %s1498_s13  }
  0x28   : > { %s1681_s16 = scalar_select %p1670_p10, %s1474_s7, %s81_s18  }
  0x29   : > { %p1683_p13 = por %p179_p12, %p178_p9  ;;  %s234_s11 = sand.u32 1, %s1474_s7  }
  0x2a   : > { %2085 = sst [smem:[#allocation30_spill]] %s1681_s16  ;;  %s911_s1 = sshll.u32 %s234_s11, 3 }
  0x2b   : > { %s2086_s25 = scalar_select %p1683_p13, 1, 0 }
  0x2c   : > { %s1692_s19 = scalar_select %p1670_p10, %s1450_s27, %s162_s23  }
  0x2d   : > { %s241_s26 = sadd.s32 %s1494_s12, %s74_s17  ;;  %s236_s15 = scalar_lea.vmem [#allocation11], %s911_s1 }
  0x2e   : > { %s1697_s22 = sshll.u32 %s241_s26, 7  ;;  %s245_s18 = sshll.u32 %s236_s15, 4  ;;  %s1705_s18 = int_to_ptr.vmem [resolvable:$true] %s245_s18 }
  0x2f   : > { %s2087_s3 = sld [smem:[#allocation32_spill]]  ;;  %p1711_p4 = pnand %p2059_p3, %p1654_p5 }
  0x30   : > { %s1717_s26 = scalar_lea.sflag [#allocation12], %s232_s6 }
  0x31   : > { %p1216_p12 = pneg %p1711_p4 }
  0x35   : > { %s1703_s4 = scalar_lea.hbm %s2087_s3, %s1697_s22  ;;  %s1219_s21 = scalar_lea.hbm %s2087_s3, 256 }
  0x36   : > { %s1214_s30 = scalar_lea.hbm %s1703_s4, 128  ;;  %p1220_p5 = scmp.lt.u32.totalorder %s1703_s4, %s2087_s3 }
  0x37   : > { %p1215_p9 = scmp.ne.s32.totalorder %s1703_s4, %s1214_s30  ;;  %p1221_p3 = scmp.lt.u32.totalorder %s1219_s21, %s1214_s30 }
  0x38   : > { %p1223_p7 = scmp.lt.u32.totalorder %s1214_s30, %s1703_s4 }
  0x39   : > { %p1217_p1 = pnand %p1216_p12, %p1215_p9  ;;  %p1222_p2 = por %p1221_p3, %p1220_p5 }
  0x3b   : > { %p1218_p0 = pneg %p1217_p1  ;;  %p1224_p8 = por %p1223_p7, %p1222_p2 }
  0x3d   : > { %p1225_p13 = pnand %p1224_p8, %p1218_p0 }
  0x3f   : > { %1228 = shalt.err (!%p1225_p13)
}
  0x40   : > { %s1229_s6 = scalar_lea.vmem %s1705_s18, 128  ;;  %s1500_s15 = smov [#allocation11]  }
  0x41   : > { %p1230_p1 = scmp.ne.s32.totalorder %s1705_s18, %s1229_s6  ;;  %s1234_s16 = sshll.u32 %s1500_s15, 4  ;;  %s1235_s16 = int_to_ptr.vmem [resolvable:$false] %s1234_s16 }
  0x42   : > { %s1236_s17 = scalar_lea.vmem %s1235_s16, 256  ;;  %p1237_p6 = scmp.lt.s32.totalorder %s1705_s18, %s1235_s16 }
  0x43   : > { %p1232_p9 = pnand %p1230_p1, %p1216_p12  ;;  %p1238_p3 = scmp.lt.s32.totalorder %s1236_s17, %s1229_s6 }
  0x45   : > { %p1233_p11 = pneg %p1232_p9  ;;  %p1239_p5 = por %p1238_p3, %p1237_p6 }
  0x47   : > { %p1240_p2 = pnand %p1239_p5, %p1233_p11 }
  0x49   : > { %1243 = shalt.err (!%p1240_p2)
}
  0x4a   : > { %1050 = dma.hbm_to_vmem [thread:$0]  (!%p1711_p4), %s1703_s4, 128, %s1705_s18, %s1717_s26  }
  0x4b   : > { %p2089_p0 = scmp.lt.s32.totalorder %s1498_s13, 3  ;;  %p2090_p13 = scmp.ge.s32.totalorder %s1498_s13, 1 }
  0x4c   : > { %s1501_s21 = smov [#allocation14]   ;;  %p2092_p11 = scmp.eq.s32.totalorder %s1636_s14, 0 }
  0x4d   : > { %p1749_p7 = pnand %p2090_p13, %p2089_p0  ;;  %s198_s23 = sshll.u32 %s1501_s21, 4  ;;  %s199_s23 = int_to_ptr.vmem [resolvable:$true] %s198_s23 }
  0x4e   : > { %s1244_s4 = scalar_lea.hbm %s2045_s5, 2048 }
  0x4f   : > { %s2091_s30 = scalar_select %p1749_p7, 1, 0 }
  0x50   : > { %p1040_p6 = pneg %p1749_p7  ;;  %p1245_p4 = scmp.ne.s32.totalorder %s2045_s5, %s1244_s4 }
  0x51   : > { %p1251_p3 = scmp.lt.u32.totalorder %s1244_s4, %s2045_s5 }
  0x52   : > { %p1757_p8 = pnand %p1040_p6, %p2092_p11 }
  0x54   : > { %p1246_p12 = pneg %p1757_p8 }
  0x56   : > { %p1247_p1 = pnand %p1246_p12, %p1245_p4 }
  0x58   : > { %p1248_p9 = pneg %p1247_p1 }
  0x5a   : > { %p1253_p5 = pnand %p1251_p3, %p1248_p9 }
  0x5c   : > { %1256 = shalt.err (!%p1253_p5)
}
  0x5d   : > { %s1257_s21 = scalar_lea.vmem %s199_s23, 2048  ;;  %p1265_p6 = scmp.lt.s32.totalorder %s199_s23, %s199_s23 }
  0x5e   : > { %p1258_p2 = scmp.ne.s32.totalorder %s199_s23, %s1257_s21  ;;  %p1266_p11 = scmp.lt.s32.totalorder %s1257_s21, %s1257_s21 }
  0x60   : > { %p1260_p0 = pnand %p1258_p2, %p1246_p12  ;;  %p1267_p7 = por %p1266_p11, %p1265_p6 }
  0x62   : > { %p1261_p13 = pneg %p1260_p0 }
  0x64   : > { %p1268_p10 = pnand %p1267_p7, %p1261_p13 }
  0x66   : > { %1271 = shalt.err (!%p1268_p10)
}
  0x67   : > { %s1502_s1 = smov 128   ;;  %s1503_s6 = smov 8  }
  0x68   : > { %1043 = dma.hbm_to_vmem [thread:$0]  (!%p1757_p8), %s2045_s5, 2048, %s199_s23, [#allocation15], %s1502_s1, %s1502_s1, %s1503_s6  }
  0x69   : > { %s51_s15 = sadd.s32 1, %s1486_s10  ;;  %p2094_p10 = scmp.ne.s32.totalorder %s2082_s24, 0 }
  0x6a   : > { %p58_p7 = scmp.ne.s32.totalorder %s1486_s10, %s1482_s9  ;;  %p64_p4 = scmp.ne.s32.totalorder %s1482_s9, %s1478_s8 }
  0x6b   : > { %s1781_s16 = scalar_select %p2094_p10, %s1486_s10, %s51_s15  }
  0x6c   : > { %s212_s17 = sand.u32 1, %s1486_s10   ;;  %s221_s21 = sadd.s32 %s1494_s12, %s1650_s20 }
  0x6d   : > { %p2095_p12 = scmp.eq.s32.totalorder %s1498_s13, 0  ;;  %p2096_p9 = scmp.eq.s32.totalorder %s1636_s14, 0 }
  0x6e   : > { %s909_s11 = sshll.u32 %s212_s17, 3  ;;  %s910_s7 = sshll.u32 %s221_s21, 7 }
  0x6f   : > { %p60_p1 = por %p2095_p12, %p58_p7  ;;  %p1794_p3 = por %p2096_p9, %p64_p4 }
  0x70   : > { %s2098_s2 = sld [smem:[#allocation31_spill]]  ;;  %s216_s8 = scalar_lea.vmem [#allocation8], %s909_s11 }
  0x71   : > { %s2097_s3 = scalar_select %p1794_p3, 1, 0 }
  0x72   : > { %s225_s20 = sshll.u32 %s216_s8, 4  ;;  %p2099_p8 = scmp.lt.s32.totalorder %s1498_s13, 2  ;;  %s1803_s20 = int_to_ptr.vmem [resolvable:$true] %s225_s20 }
  0x73   : > { %s213_s6 = scalar_lea.sflag [#allocation9], %s212_s17 }
  0x74   : > { %p1807_p5 = pnand %p2099_p8, %p60_p1 }
  0x76   : > { %s1801_s23 = scalar_lea.hbm %s2098_s2, %s910_s7  ;;  %p1274_p0 = pneg %p1807_p5 }
  0x77   : > { %s1272_s15 = scalar_lea.hbm %s1801_s23, 128  ;;  %s1277_s11 = scalar_lea.hbm %s2098_s2, 256 }
  0x78   : > { %p1273_p2 = scmp.ne.s32.totalorder %s1801_s23, %s1272_s15  ;;  %p1278_p11 = scmp.lt.u32.totalorder %s1801_s23, %s2098_s2 }
  0x79   : > { %p1279_p7 = scmp.lt.u32.totalorder %s1277_s11, %s1272_s15  ;;  %p1281_p12 = scmp.lt.u32.totalorder %s1272_s15, %s1801_s23 }
  0x7a   : > { %p1275_p13 = pnand %p1274_p0, %p1273_p2 }
  0x7b   : > { %p1280_p4 = por %p1279_p7, %p1278_p11 }
  0x7c   : > { %p1276_p6 = pneg %p1275_p13 }
  0x7d   : > { %p1282_p1 = por %p1281_p12, %p1280_p4 }
  0x7f   : > { %p1283_p9 = pnand %p1282_p1, %p1276_p6 }
  0x81   : > { %1286 = shalt.err (!%p1283_p9)
}
  0x82   : > { %s1287_s17 = scalar_lea.vmem %s1803_s20, 128  ;;  %s1504_s8 = smov [#allocation8]  }
  0x83   : > { %p1288_p8 = scmp.ne.s32.totalorder %s1803_s20, %s1287_s17  ;;  %s1292_s7 = sshll.u32 %s1504_s8, 4  ;;  %s1293_s7 = int_to_ptr.vmem [resolvable:$false] %s1292_s7 }
  0x84   : > { %s1294_s21 = scalar_lea.vmem %s1293_s7, 256  ;;  %p1295_p3 = scmp.lt.s32.totalorder %s1803_s20, %s1293_s7 }
  0x85   : > { %p1290_p2 = pnand %p1288_p8, %p1274_p0  ;;  %p1296_p11 = scmp.lt.s32.totalorder %s1294_s21, %s1287_s17 }
  0x87   : > { %p1291_p13 = pneg %p1290_p2  ;;  %p1297_p7 = por %p1296_p11, %p1295_p3 }
  0x89   : > { %p1298_p4 = pnand %p1297_p7, %p1291_p13 }
  0x8b   : > { %1301 = shalt.err (!%p1298_p4)
}
  0x8c   : > { %1047 = dma.hbm_to_vmem [thread:$0]  (!%p1807_p5), %s1801_s23, 128, %s1803_s20, %s213_s6  }
  0x8d   : > { %s111_s15 = sadd.s32 1, %s1462_s29  ;;  %p118_p3 = scmp.ne.s32.totalorder %s1462_s29, %s1458_s0 }
  0x8e   : > { %s1840_s11 = scalar_select %p2094_p10, %s1462_s29, %s111_s15  }
  0x8f   : > { %p124_p0 = scmp.ne.s32.totalorder %s1458_s0, %s1454_s28  ;;  %s254_s1 = sand.u32 1, %s1462_s29  }
  0x90   : > { %p2101_p6 = scmp.eq.s32.totalorder %s1498_s13, 0  ;;  %p2102_p1 = scmp.eq.s32.totalorder %s1636_s14, 0 }
  0x91   : > { %s913_s18 = sshll.u32 %s254_s1, 3  ;;  %s2104_s7 = sld [smem:[#allocation33_spill]] }
  0x92   : > { %p120_p12 = por %p118_p3, %p2101_p6  ;;  %p1851_p9 = por %p124_p0, %p2102_p1 }
  0x93   : > { %p2106_p5 = scmp.lt.s32.totalorder %s1498_s13, 2  ;;  %s256_s24 = scalar_lea.vmem [#allocation13], %s913_s18 }
  0x94   : > { %s2103_s4 = scalar_select %p1851_p9, 1, 0 }
  0x95   : > { %p1863_p10 = pnand %p2106_p5, %p120_p12  ;;  %s265_s23 = sshll.u32 %s256_s24, 4  ;;  %s266_s23 = int_to_ptr.vmem [resolvable:$true] %s265_s23 }
  0x97   : > { %s2105_s21 = smov %s2104_s7  ;;  %s1859_s2 = scalar_lea.hbm %s2104_s7, %s1697_s22 }
  0x98   : > { %s1302_s20 = scalar_lea.hbm %s1859_s2, 128  ;;  %p1304_p2 = pneg %p1863_p10 }
  0x99   : > { %p1303_p8 = scmp.ne.s32.totalorder %s1859_s2, %s1302_s20  ;;  %s1307_s15 = scalar_lea.hbm %s2105_s21, 256 }
  0x9a   : > { %p1308_p7 = scmp.lt.u32.totalorder %s1859_s2, %s2105_s21  ;;  %p1309_p4 = scmp.lt.u32.totalorder %s1307_s15, %s1302_s20 }
  0x9b   : > { %p1305_p13 = pnand %p1304_p2, %p1303_p8  ;;  %p1311_p0 = scmp.lt.u32.totalorder %s1302_s20, %s1859_s2 }
  0x9c   : > { %p1310_p3 = por %p1309_p4, %p1308_p7 }
  0x9d   : > { %p1306_p11 = pneg %p1305_p13 }
  0x9e   : > { %p1312_p6 = por %p1311_p0, %p1310_p3 }
  0xa0   : > { %p1313_p12 = pnand %p1312_p6, %p1306_p11 }
  0xa2   : > { %1316 = shalt.err (!%p1313_p12)
}
  0xa3   : > { %s1317_s18 = scalar_lea.vmem %s266_s23, 128  ;;  %s1505_s8 = smov [#allocation13]  }
  0xa4   : > { %p1318_p1 = scmp.ne.s32.totalorder %s266_s23, %s1317_s18  ;;  %s1322_s7 = sshll.u32 %s1505_s8, 4  ;;  %s1323_s7 = int_to_ptr.vmem [resolvable:$false] %s1322_s7 }
  0xa5   : > { %s1324_s24 = scalar_lea.vmem %s1323_s7, 256  ;;  %p1325_p13 = scmp.lt.s32.totalorder %s266_s23, %s1323_s7 }
  0xa6   : > { %p1320_p5 = pnand %p1318_p1, %p1304_p2  ;;  %p1326_p9 = scmp.lt.s32.totalorder %s1324_s24, %s1317_s18 }
  0xa8   : > { %p1321_p8 = pneg %p1320_p5  ;;  %p1327_p4 = por %p1326_p9, %p1325_p13 }
  0xaa   : > { %p1328_p7 = pnand %p1327_p4, %p1321_p8 }
  0xac   : > { %1331 = shalt.err (!%p1328_p7)
}
  0xad   : > { %1053 = dma.hbm_to_vmem [thread:$0]  (!%p1863_p10), %s1859_s2, 128, %s266_s23, %s1717_s26  }
  0xae   : > { %p2108_p11 = scmp.ne.s32.totalorder %s2091_s30, 0 }
  0xaf   : > { %s276_s20 = sand.u32 (!%p2108_p11), 1, %s1482_s9   ;;  %p2109_p2 = scmp.ne.s32.totalorder (!%p2108_p11), %s2097_s3, 0 }
  0xb0   : > { %274 = sbr.rel (%p2108_p11) target bundleno = 1826 (0x722), region = 36  ;;  %s1892_s22 = sshll.u32 (!%p2108_p11), %s276_s20, 3 }
  0xb1   : > { %s277_s6 = scalar_lea.sflag (!%p2108_p11), [#allocation9], %s276_s20  ;;  %s280_s15 = scalar_lea.vmem (!%p2108_p11), [#allocation8], %s1892_s22 }
  0xb7   : > { %1421 = dma.done.wait (%p2109_p2), %s277_s6, 128  }
  0xb8   : > { %1423 = vsyncadd (%p2109_p2), %s277_s6, 4294967168  ;;  %s2110_s28 = sld [smem:[#allocation24_spill]]  ;;  %s2111_s1 = sld [smem:[#allocation28_spill]] }
  0xb9   : > { %s285_s2 = sand.u32 1, %s1636_s14  }
  0xba   : > { %s286_s23 = scalar_lea.sflag [#allocation12], %s285_s2 }
  0xbe   : > { %s287_s26 = sand.u32 1, %s2110_s28   ;;  %p2112_p9 = scmp.ne.s32.totalorder %s2111_s1, 0 }
  0xbf   : > { %s917_s30 = sshll.u32 %s287_s26, 3 }
  0xc0   : > { %s289_s17 = scalar_lea.vmem [#allocation11], %s917_s30 }
  0xc1   : > { %1425 = dma.done.wait (%p2112_p9), %s286_s23, 128  }
  0xc2   : > { %1427 = vsyncadd (%p2112_p9), %s286_s23, 4294967168  ;;  %s296_s18 = sand.u32 1, %s1458_s0   ;;  %p2113_p10 = scmp.ne.s32.totalorder %s2103_s4, 0 }
  0xc3   : > { %s918_s8 = sshll.u32 %s296_s18, 3 }
  0xc4   : > { %s298_s7 = scalar_lea.vmem [#allocation13], %s918_s8 }
  0xc5   : > { %1429 = dma.done.wait (%p2113_p10), %s286_s23, 128  }
  0xc6   : > { %1431 = vsyncadd (%p2113_p10), %s286_s23, 4294967168  ;;  %p2114_p3 = scmp.eq.s32.totalorder %s1636_s14, 0 }
  0xc8   : > { %1433 = dma.done.wait (%p2114_p3), [#allocation15], 2048   ;;  %p2115_p0 = pmov %p2114_p3 }
  0xc9   : > { %s2116_s3 = sld [smem:[#allocation23_spill]]  ;;  %s1915_s20 = sld [smem:[#allocation6]] }
  0xca   : > { %1435 = vsyncadd (%p2115_p0), [#allocation15], 4294965248  ;;  %s1917_s6 = sld [smem:[#allocation7]] }
  0xcf   : > { %s334_s24 = sand.u32 1, %s2116_s3  }
  0xd0   : > { %s1921_s28 = sshll.u32 %s334_s24, 3  ;;  %p921_p6 = scmp.ne.s32.totalorder %s1917_s6, 0 }
  0xd1   : > { %s336_s1 = scalar_lea.vmem [#allocation16], %s1921_s28  ;;  %vm347_vm0 = vcmask (!%p921_p6), 7168   ;;  %v1506_v0 = vmov (!%p921_p6), -inf   ;;  %v1507_v1 = vmov (!%p921_p6), 0.0  }
  0xd2   : > { %346 = sbr.rel (%p921_p6) target bundleno = 217 (0xd9), region = 56  ;;  %348 = vst.msk [vmem:[#allocation2] sm:$0xff] (!%p921_p6), %vm347_vm0, %v1506_v0  ;;  %349 = vst.msk [vmem:[#allocation3] sm:$0xff] (!%p921_p6), %vm347_vm0, %v1507_v1 }
  0xd3   : > { %350 = vst [vmem:[#allocation4] sm:$0xff] (!%p921_p6), %v1507_v1 }
  0xd9 PF: > { %v1925_v2 = vld [vmem:[%s298_s7] sm:$0xff]  ;;  %v352_v3 = vld [vmem:[%s289_s17] sm:$0xff]  ;;  %v1508_v4 = vmov 0.0   ;;  %vm1509_vm1 = vmmov 0   ;;  %p922_p12 = scmp.ne.s32.totalorder %s1917_s6, %s1915_s20 }
  0xda   : > { %954 = vmatprep.subr.mxu0 %v1508_v4  ;;  %956 = vmatprep.mubr.msk.f32.mxu0 %vm1509_vm1, %v1508_v4  ;;  %v351_v5 = vld [vmem:[%s280_s15] sm:$0xff]  ;;  %v428_v8 = vlaneseq (!%p922_p12)  ;;  %vm435_vm2 = vcmask (!%p922_p12), 64512   ;;  %v1510_v13 = vmov (!%p922_p12), 0   ;;  %vm457_vm4 = vcmask (!%p922_p12), 7168   ;;  %v451_v26 = vld [vmem:[#allocation3] sm:$0xff] (!%p922_p12)  ;;  %v459_v30 = vld [vmem:[#allocation4] sm:$0xff] (!%p922_p12) }
  0xdb   : > { %955 = vmatpush3.xpose.msra.mxu0 %v352_v3  ;;  %1199 = vset.pattern.permute.xlu0 (!%p922_p12), %v1510_v13  ;;  %v434_v14 = vld [vmem:[#allocation2] sm:$0xff] (!%p922_p12)  ;;  %v1511_v18 = vmov (!%p922_p12), 0.0   ;;  %vm1512_vm5 = vmmov (!%p922_p12), 0  }
  0xdc   : > { %v429_v9 = vshrl.u32 (!%p922_p12), %v428_v8, 7  ;;  %v431_v10 = vand.u32 (!%p922_p12), 127, %v428_v8  ;;  %1200 = vset.pattern.permute.xlu1 (!%p922_p12), %v1510_v13  ;;  %959 = vmatprep.subr.mxu0 (!%p922_p12), %v1511_v18 }
  0xde   : > { %957 = vmatmul.mubr.f32.vlgmr.msra.gmra.mrb[0].mxu0 %v351_v5  ;;  %vm432_vm3 = vcmp.ge.s32.totalorder (!%p922_p12), %v429_v9, %v431_v10 }
  0xdf   : > { %961 = vmatprep.mubr.msk.f32.mxu0 (!%p922_p12), %vm1512_vm5, %v1511_v18  ;;  %960 = vmatpush3.msra.mxu0 (!%p922_p12), %v1925_v2 }
 0x1ac   : > { %427 = sbr.rel (%p922_p12) target bundleno = 938 (0x3aa), region = 60 }
 0x1b1   : > { %v1929_v6 = vpop.f32.mrb[0].mxu0 }
 0x1b2   : > { %v958_v7 = vpop.f32.mrb[1].mxu0  ;;  %v433_v11 = vsel (!%p922_p12), %vm432_vm3, %v1929_v6, -1e+30 }
 0x1b3   : > { %v436_v12 = vsel %vm435_vm2, %v433_v11, -inf }
 0x1b4   : > { %437 = vmax.xlane.f32.xlu0 %v436_v12 }
 0x241   : > { %v438_v15 = vpop.xlane.xlu0 %437 }
 0x242   : > { %v439_v16 = vmax.f32 %v434_v14, %v438_v15 }
 0x244   : > { %v440_v17 = vsub.f32 %v434_v14, %v439_v16  ;;  %541 = vst.msk [vmem:[#allocation2] sm:$0xff] %vm457_vm4, %v439_v16  ;;  %445 = vperm.xlu0 %1199, %v439_v16  }
 0x246   : > { %v441_v24 = vmul.f32 1.442695, %v440_v17 }
 0x2c3   : > { %v446_v19 = vpop.permute.xlu0 %445 }
 0x2c4   : > { %v448_v20 = vsub.f32 %v433_v11, %v446_v19 }
 0x2c6   : > { %v449_v21 = vmul.f32 1.442695, %v448_v20 }
 0x2c8   : > { %1201 = vpow2.f32 %v449_v21 }
 0x2c9   : > { %1203 = vpow2.f32 %v441_v24 }
 0x2d2   : > { %v1202_v22 = vpop.eup %1201 }
 0x2d3   : > { %962 = vmatmul.mubr.msk.f32.vlgmr.msra.gmra.mrb[0].mxu0 %vm435_vm2, %v1202_v22  ;;  %v453_v23 = vsel %vm435_vm2, %v1202_v22, 0.0  ;;  %v1204_v25 = vpop.eup %1203 }
 0x2d4   : > { %454 = vadd.xlane.f32.xlu1 %v453_v23  ;;  %v452_v27 = vmul.f32 %v1204_v25, %v451_v26 }
 0x2e5   : > { %462 = vperm.xlu1 %1200, %v1204_v25  }
 0x361   : > { %v455_v28 = vpop.xlane.xlu1 %454 }
 0x362   : > { %v456_v29 = vadd.f32 %v455_v28, %v452_v27 }
 0x364   : > { %458 = vst.msk [vmem:[#allocation3] sm:$0xff] %vm457_vm4, %v456_v29 }
 0x365   : > { %v463_v31 = vpop.permute.xlu1 %462 }
 0x366   : > { %v465_v32 = vmul.f32 %v463_v31, %v459_v30 }
 0x3a6   : > { %v535_v33 = vpop.f32.mrb[0].mxu0 }
 0x3a7   : > { %v539_v34 = vadd.f32 %v535_v33, %v465_v32  ;;  %v963_v35 = vpop.f32.mrb[1].mxu0 }
 0x3a9   : > { %540 = vst [vmem:[#allocation4] sm:$0xff] %v539_v34 }
 0x3aa PF: > { %p924_p1 = scmp.eq.s32.totalorder %s1917_s6, %s1915_s20 }
 0x3ab   : > { %vm547_vm6 = vcmask (!%p924_p1), 64512   ;;  %v1513_v37 = vmov (!%p924_p1), 0   ;;  %v546_v38 = vld [vmem:[#allocation2] sm:$0xff] (!%p924_p1)  ;;  %vm569_vm7 = vcmask (!%p924_p1), 7168   ;;  %v1514_v42 = vmov (!%p924_p1), 0.0   ;;  %v563_v50 = vld [vmem:[#allocation3] sm:$0xff] (!%p924_p1) }
 0x3ac   : > { %545 = sbr.rel (%p924_p1) target bundleno = 1443 (0x5a3), region = 64  ;;  %v548_v36 = vsel (!%p924_p1), %vm547_vm6, %v1929_v6, -inf  ;;  %1205 = vset.pattern.permute.xlu0 (!%p924_p1), %v1513_v37  ;;  %1206 = vset.pattern.permute.xlu1 (!%p924_p1), %v1513_v37  ;;  %vm1515_vm8 = vmmov (!%p924_p1), 0  }
 0x3ad   : > { %549 = vmax.xlane.f32.xlu0 (!%p924_p1), %v548_v36  ;;  %964 = vmatprep.subr.mxu0 (!%p924_p1), %v1514_v42 }
 0x3ae   : > { %966 = vmatprep.mubr.msk.f32.mxu0 (!%p924_p1), %vm1515_vm8, %v1514_v42  ;;  %965 = vmatpush3.msra.mxu0 (!%p924_p1), %v1925_v2 }
 0x3b0   : > { %v571_v54 = vld [vmem:[#allocation4] sm:$0xff] (!%p924_p1) }
 0x43a   : > { %v550_v39 = vpop.xlane.xlu0 %549 }
 0x43b   : > { %v551_v40 = vmax.f32 %v546_v38, %v550_v39 }
 0x43d   : > { %v552_v41 = vsub.f32 %v546_v38, %v551_v40  ;;  %653 = vst.msk [vmem:[#allocation2] sm:$0xff] %vm569_vm7, %v551_v40  ;;  %557 = vperm.xlu0 %1205, %v551_v40  }
 0x43f   : > { %v553_v48 = vmul.f32 1.442695, %v552_v41 }
 0x4bc   : > { %v558_v43 = vpop.permute.xlu0 %557 }
 0x4bd   : > { %v560_v44 = vsub.f32 %v1929_v6, %v558_v43 }
 0x4bf   : > { %v561_v45 = vmul.f32 1.442695, %v560_v44 }
 0x4c1   : > { %1207 = vpow2.f32 %v561_v45 }
 0x4c2   : > { %1209 = vpow2.f32 %v553_v48 }
 0x4cb   : > { %v1208_v46 = vpop.eup %1207 }
 0x4cc   : > { %967 = vmatmul.mubr.msk.f32.vlgmr.msra.gmra.mrb[0].mxu0 %vm547_vm6, %v1208_v46  ;;  %v565_v47 = vsel %vm547_vm6, %v1208_v46, 0.0  ;;  %v1210_v49 = vpop.eup %1209 }
 0x4cd   : > { %566 = vadd.xlane.f32.xlu1 %v565_v47  ;;  %v564_v51 = vmul.f32 %v1210_v49, %v563_v50 }
 0x4de   : > { %574 = vperm.xlu1 %1206, %v1210_v49  }
 0x55a   : > { %v567_v52 = vpop.xlane.xlu1 %566 }
 0x55b   : > { %v568_v53 = vadd.f32 %v567_v52, %v564_v51 }
 0x55d   : > { %570 = vst.msk [vmem:[#allocation3] sm:$0xff] %vm569_vm7, %v568_v53 }
 0x55e   : > { %v575_v55 = vpop.permute.xlu1 %574 }
 0x55f   : > { %v577_v56 = vmul.f32 %v575_v55, %v571_v54 }
 0x59f   : > { %v647_v57 = vpop.f32.mrb[0].mxu0 }
 0x5a0   : > { %v651_v58 = vadd.f32 %v647_v57, %v577_v56  ;;  %v968_v59 = vpop.f32.mrb[1].mxu0 }
 0x5a2   : > { %652 = vst [vmem:[#allocation4] sm:$0xff] %v651_v58 }
 0x5a3 PF: > { %656 = sbr.rel (%p922_p12) target bundleno = 1798 (0x706), region = 68  ;;  %v657_v60 = vld [vmem:[#allocation3] sm:$0xff] (!%p922_p12)  ;;  %v667_v62 = vld [vmem:[#allocation14 + $0x8] sm:$0xff] (!%p922_p12)  ;;  %v1516_v63 = vmov (!%p922_p12), 0   ;;  %v1517_v0 = vmov (!%p922_p12), 0.0|0.0   ;;  %v668_v2 = vld [vmem:[#allocation14 + $0x10] sm:$0xff] (!%p922_p12) }
 0x5a4   : > { %v666_v61 = vld [vmem:[#allocation14] sm:$0xff] (!%p922_p12)  ;;  %1211 = vset.pattern.permute.xlu0 (!%p922_p12), %v1516_v63  ;;  %1212 = vrcp.f32 (!%p922_p12), %v657_v60  ;;  %1004 = vmatprep.subr.bf16.mxu0 (!%p922_p12), %v1517_v0  ;;  %v669_v3 = vld [vmem:[#allocation14 + $0x18] sm:$0xff] (!%p922_p12)  ;;  %v671_v6 = vld [vmem:[#allocation14 + $0x28] sm:$0xff] (!%p922_p12)  ;;  %vm1518_vm9 = vmmov (!%p922_p12), 0   ;;  %v1519_v14 = vmov (!%p922_p12), 0.0  }
 0x5a5   : > { %v1005_v1 = vpack.c.bf16 (!%p922_p12), %v667_v62, %v666_v61  ;;  %v1008_v4 = vpack.c.bf16 (!%p922_p12), %v669_v3, %v668_v2  ;;  %v670_v5 = vld [vmem:[#allocation14 + $0x20] sm:$0xff] (!%p922_p12)  ;;  %v672_v8 = vld [vmem:[#allocation14 + $0x30] sm:$0xff] (!%p922_p12)  ;;  %v673_v9 = vld [vmem:[#allocation14 + $0x38] sm:$0xff] (!%p922_p12)  ;;  %1001 = vmatprep.mubr.msk.f32.mxu0 (!%p922_p12), %vm1518_vm9, %v1519_v14 }
 0x5a6   : > { %v1011_v7 = vpack.c.bf16 (!%p922_p12), %v671_v6, %v670_v5  ;;  %v1014_v11 = vpack.c.bf16 (!%p922_p12), %v673_v9, %v672_v8  ;;  %v674_v12 = vld [vmem:[#allocation14 + $0x40] sm:$0xff] (!%p922_p12)  ;;  %v675_v13 = vld [vmem:[#allocation14 + $0x48] sm:$0xff] (!%p922_p12)  ;;  %v676_v16 = vld [vmem:[#allocation14 + $0x50] sm:$0xff] (!%p922_p12) }
 0x5a7   : > { %1006 = vmatpush3.bf16.msra.mxu0 (!%p922_p12), %v1005_v1  ;;  %v1017_v15 = vpack.c.bf16 (!%p922_p12), %v675_v13, %v674_v12  ;;  %v677_v17 = vld [vmem:[#allocation14 + $0x58] sm:$0xff] (!%p922_p12)  ;;  %v678_v19 = vld [vmem:[#allocation14 + $0x60] sm:$0xff] (!%p922_p12)  ;;  %v679_v20 = vld [vmem:[#allocation14 + $0x68] sm:$0xff] (!%p922_p12) }
 0x5a8   : > { %1007 = vmatprep.subr.bf16.mxu0 (!%p922_p12), %v1517_v0  ;;  %v1020_v18 = vpack.c.bf16 (!%p922_p12), %v677_v17, %v676_v16  ;;  %v1023_v21 = vpack.c.bf16 (!%p922_p12), %v679_v20, %v678_v19  ;;  %v680_v22 = vld [vmem:[#allocation14 + $0x70] sm:$0xff] (!%p922_p12)  ;;  %v681_v23 = vld [vmem:[#allocation14 + $0x78] sm:$0xff] (!%p922_p12) }
 0x5a9   : > { %v1026_v24 = vpack.c.bf16 (!%p922_p12), %v681_v23, %v680_v22  ;;  %v659_v25 = vld [vmem:[#allocation4] sm:$0xff] (!%p922_p12) }
 0x5ab   : > { %1009 = vmatpush3.bf16.msra.mxu0 %v1008_v4 }
 0x5ac   : > { %1010 = vmatprep.subr.bf16.mxu0 %v1517_v0 }
 0x5ae   : > { %v1213_v10 = vpop.eup %1212 }
 0x5af   : > { %1012 = vmatpush3.bf16.msra.mxu0 %v1011_v7  ;;  %662 = vperm.xlu0 %1211, %v1213_v10  }
 0x5b0   : > { %1013 = vmatprep.subr.bf16.mxu0 %v1517_v0 }
 0x5b3   : > { %1015 = vmatpush3.bf16.msra.mxu0 %v1014_v11 }
 0x5b4   : > { %1016 = vmatprep.subr.bf16.mxu0 %v1517_v0 }
 0x5b7   : > { %1018 = vmatpush3.bf16.msra.mxu0 %v1017_v15 }
 0x5b8   : > { %1019 = vmatprep.subr.bf16.mxu0 %v1517_v0 }
 0x5bb   : > { %1021 = vmatpush3.bf16.msra.mxu0 %v1020_v18 }
 0x5bc   : > { %1022 = vmatprep.subr.bf16.mxu0 %v1517_v0 }
 0x5bf   : > { %1024 = vmatpush3.bf16.msra.mxu0 %v1023_v21 }
 0x5c0   : > { %1025 = vmatprep.subr.bf16.mxu0 %v1517_v0 }
 0x5c3   : > { %1027 = vmatpush3.bf16.msra.mxu0 %v1026_v24 }
 0x62e   : > { %v663_v26 = vpop.permute.xlu0 %662 }
 0x62f   : > { %v665_v27 = vmul.f32 %v663_v26, %v659_v25 }
 0x631   : > { %1002 = vmatmul.mubr.f32.vlgmr.msra.gmra.mrb[0].mxu0 %v665_v27 }
 0x704   : > { %v748_v28 = vpop.f32.mrb[0].mxu0 }
 0x705   : > { %752 = vst [vmem:[%s336_s1] sm:$0xff] %v748_v28  ;;  %v1003_v29 = vpop.f32.mrb[1].mxu0 }
 0x706 PF: > { %s761_s14 = sld [smem:[#allocation6]]  ;;  %s2117_s4 = sld [smem:[#allocation26_spill]] }
 0x707   : > { %s2119_s15 = sld [smem:[#allocation29_spill]]  ;;  %s769_s2 = sshll.u32 %s336_s1, 4  ;;  %s1961_s2 = int_to_ptr.vmem [resolvable:$true] %s769_s2 }
 0x708   : > { %s2120_s18 = sld [smem:[#allocation34_spill]]  ;;  %s754_s7 = scalar_lea.sflag [#allocation10], %s334_s24 }
 0x709   : > { %s1332_s3 = scalar_lea.vmem %s1961_s2, 128  ;;  %s1520_s20 = smov [#allocation16]  }
 0x70a   : > { %p1333_p5 = scmp.ne.s32.totalorder %s1961_s2, %s1332_s3  ;;  %s1336_s6 = sshll.u32 %s1520_s20, 4  ;;  %s1337_s6 = int_to_ptr.vmem [resolvable:$false] %s1336_s6 }
 0x70b   : > { %s1338_s28 = scalar_lea.vmem %s1337_s6, 256  ;;  %p1339_p7 = scmp.lt.s32.totalorder %s1961_s2, %s1337_s6 }
 0x70c   : > { %s765_s26 = sadd.s32 %s2117_s4, %s761_s14  ;;  %p1340_p11 = scmp.lt.s32.totalorder %s1338_s28, %s1332_s3 }
 0x70d   : > { %s928_s30 = sshll.u32 %s765_s26, 7  ;;  %p2121_p8 = scmp.ne.s32.totalorder %s2119_s15, 0 }
 0x70e   : > { %s767_s8 = scalar_lea.hbm %s2120_s18, %s928_s30  ;;  %p1341_p2 = por %p1340_p11, %p1339_p7 }
 0x70f   : > { %p1334_p13 = pnand %p1333_p5, %p2121_p8 }
 0x711   : > { %p1335_p4 = pneg %p1334_p13 }
 0x713   : > { %p1342_p9 = pnand %p1341_p2, %p1335_p4 }
 0x715   : > { %1345 = shalt.err (!%p1342_p9)
}
 0x716   : > { %s1346_s1 = scalar_lea.hbm %s767_s8, 128  ;;  %s1350_s4 = scalar_lea.hbm %s2120_s18, 256 }
 0x717   : > { %p1347_p10 = scmp.ne.s32.totalorder %s767_s8, %s1346_s1  ;;  %p1351_p6 = scmp.lt.u32.totalorder %s767_s8, %s2120_s18 }
 0x718   : > { %p1352_p12 = scmp.lt.u32.totalorder %s1350_s4, %s1346_s1  ;;  %p1354_p5 = scmp.lt.u32.totalorder %s1346_s1, %s767_s8 }
 0x719   : > { %p1348_p3 = pnand %p1347_p10, %p2121_p8 }
 0x71a   : > { %p1353_p1 = por %p1352_p12, %p1351_p6 }
 0x71b   : > { %p1349_p0 = pneg %p1348_p3 }
 0x71c   : > { %p1355_p13 = por %p1354_p5, %p1353_p1 }
 0x71e   : > { %p1356_p4 = pnand %p1355_p13, %p1349_p0 }
 0x720   : > { %1359 = shalt.err (!%p1356_p4)
}
 0x721   : > { %1038 = dma.vmem_to_hbm [thread:$0]  (%p2121_p8), %s1961_s2, 128, %s767_s8, %s754_s7  }
 0x722 PF: > { %s2122_s30 = sld [smem:[#allocation22_spill]]  ;;  %p2123_p7 = scmp.ne.s32.totalorder %s2086_s25, 0 }
 0x723   : > { %p2124_p11 = scmp.ge.s32.totalorder %s1498_s13, 2 }
 0x725   : > { %p1055_p2 = pnand %p2124_p11, %p2123_p7 }
 0x728   : > { %s781_s23 = sand.u32 1, %s2122_s30  }
 0x729   : > { %s782_s17 = scalar_lea.sflag [#allocation10], %s781_s23 }
 0x72a   : > { %1437 = dma.done.wait (!%p1055_p2), %s782_s17, 128  }
 0x72b   : > { %1439 = vsyncadd (!%p1055_p2), %s782_s17, 4294967168  ;;  %s28_s13 = sadd.s32 1, %s1498_s13   ;;  %s2126_s25 = sld [smem:[#allocation23_spill]] }
 0x72c   : > { %p1990_p9 = scmp.ge.s32.totalorder %s28_s13, 4   ;;  %s2127_s1 = sld [smem:[#allocation24_spill]] }
 0x72d   : > { %s2128_s30 = sld [smem:[#allocation25_spill]]  ;;  %s2129_s7 = sld [smem:[#allocation30_spill]] }
 0x72e   : > { %s2130_s15 = sld [smem:[#allocation27_spill]]  ;;  %s2131_s26 = smov %s1450_s27 }
 0x72f   : > { %s2132_s27 = smov %s1692_s19  ;;  %s2133_s28 = smov %s1458_s0 }
 0x730   : > { %s2134_s0 = smov %s1462_s29  ;;  %s2135_s29 = smov %s1840_s11 }
 0x731   : > { %s2136_s8 = smov %s1482_s9  ;;  %s2137_s9 = smov %s1486_s10 }
 0x732   : > { %s2138_s10 = smov %s1781_s16  ;;  %s2139_s11 = smov %s1494_s12 }
 0x733   :  { %27 = sbr.rel (!%p1990_p9) target bundleno = 21 (0x15), region = 125 }
 0x734   : > { %s2140_s12 = smov %s2130_s15 }
 0x73a   :  { %787 = vsyncpa [#allocation9], 1 }
 0x73b   :  { %789 = vsyncpa [#allocation9 + $0x1], 1 }
 0x73c   :  { %790 = vsyncpa [#allocation12], 1 }
 0x73d   :  { %792 = vsyncpa [#allocation12 + $0x1], 1 }
 0x73e   :  { %793 = vsyncpa [#allocation15], 1 }
 0x73f   :  { %794 = vsyncpa [#allocation10], 1 }
 0x740   :  { %796 = vsyncpa [#allocation10 + $0x1], 1 }

</bundles_post_ra>
